<compile_context>
chip_gen: v5e
topology: v5e:2x2
jax: 0.10.0
libtpu: 0.0.40
codegen_flags: <defaults>
</compile_context>

<pallas_src>
import functools
import math

import jax
import jax.numpy as jnp
from jax import lax
from jax.experimental import pallas as pl
from jax.experimental.pallas import tpu as pltpu

_CHUNK = 1024  # lanes (batch rows) processed per inner-loop iteration


def _round_up(x, m):
    return int(pl.cdiv(x, m) * m)


def _choose_tiling(batch, features):
    """Returns (tile_b, chunk). tile_b is the per-grid-step DMA tile (rows),
    chunk the inner-loop working set (rows); tile_b % chunk == 0."""
    b128 = _round_up(max(int(batch), 1), 128)
    lanes_f = _round_up(max(int(features), 1), 128)
    # Per-row VMEM bytes: double-buffered lane-padded x row + double-buffered output slot.
    per_row = 2 * lanes_f * 4 + 64
    budget = 24 * 1024 * 1024  # conservative for v7x (64 MiB physical VMEM)
    rows_by_vmem = max(128, (budget // per_row) // 128 * 128)

    chunk = min(_CHUNK, b128)
    if b128 <= min(rows_by_vmem, 16384):
        # Single grid step: block == full (padded) array, no tiling constraints.
        tile_b = _round_up(b128, chunk)
    else:
        # Multi-step: tile_b multiple of 8*chunk so the (tile_b//chunk, chunk) output
        # block satisfies (8,128) tiling; b128 > 16384 here, so >= 2 grid steps feed
        # both v7x TensorCores.
        step = 8 * chunk
        tile_b = max(step, min(16384, (rows_by_vmem // step) * step))
    return tile_b, chunk


def _qnet_kernel(x_ref, w1_ref, b1_ref, w2_ref, b2_ref, w3_ref, b3_ref, o_ref, *, chunk):
    """One batch tile of the MLP, batch on the 128-lane axis.

    x_ref : (TILE_B, F)   streamed batch tile (VMEM)
    w1_ref: (3, F)        resident layer-1 weights (VMEM)
    b1_ref: (3,)  w2_ref: (9,)  b2_ref: (3,)  w3_ref: (3,)  b3_ref: (1,)   SMEM scalars
    o_ref : (TILE_B // chunk, chunk)   lane-dense output rows
    """
    n_chunks = x_ref.shape[0] // chunk

    # Hoist all SMEM scalar reads out of the inner loop.
    b1_0, b1_1, b1_2 = b1_ref[0], b1_ref[1], b1_ref[2]
    w2_00, w2_01, w2_02 = w2_ref[0], w2_ref[1], w2_ref[2]
    w2_10, w2_11, w2_12 = w2_ref[3], w2_ref[4], w2_ref[5]
    w2_20, w2_21, w2_22 = w2_ref[6], w2_ref[7], w2_ref[8]
    b2_0, b2_1, b2_2 = b2_ref[0], b2_ref[1], b2_ref[2]
    w3_0, w3_1, w3_2 = w3_ref[0], w3_ref[1], w3_ref[2]
    b3_0 = b3_ref[0]

    def body(c, carry):
        start = pl.multiple_of(c * chunk, chunk)
        xc = x_ref[pl.ds(start, chunk), :]                               # (chunk, F)
        # Layer 1 on the MXU: contraction over F, batch stays on lanes -> (3, chunk).
        h1 = lax.dot_general(
            w1_ref[...], xc,
            dimension_numbers=(((1,), (1,)), ((), ())),
            preferred_element_type=jnp.float32,
        )
        h1_0 = jnp.maximum(h1[0:1, :] + b1_0, 0.0)                       # (1, chunk)
        h1_1 = jnp.maximum(h1[1:2, :] + b1_1, 0.0)
        h1_2 = jnp.maximum(h1[2:3, :] + b1_2, 0.0)
        # Layers 2 & 3 as VPU scalar-broadcast multiply-adds (MXU left alone).
        h2_0 = jnp.maximum(w2_00 * h1_0 + w2_01 * h1_1 + w2_02 * h1_2 + b2_0, 0.0)
        h2_1 = jnp.maximum(w2_10 * h1_0 + w2_11 * h1_1 + w2_12 * h1_2 + b2_1, 0.0)
        h2_2 = jnp.maximum(w2_20 * h1_0 + w2_21 * h1_1 + w2_22 * h1_2 + b2_2, 0.0)
        out = w3_0 * h2_0 + w3_1 * h2_1 + w3_2 * h2_2 + b3_0             # (1, chunk)
        o_ref[pl.ds(c, 1), :] = out.astype(o_ref.dtype)
        return carry

    lax.fori_loop(0, n_chunks, body, 0, unroll=min(4, n_chunks))


def qnetwork_forward(x, params):
    """x: (B, F) float32; params: dict of w1,b1,w2,b2,w3,b3 (see init_qnetwork_params)."""
    B, F = x.shape
    w1, b1, w2, b2, w3, b3 = (
        params["w1"], params["b1"], params["w2"],
        params["b2"], params["w3"], params["b3"],
    )
    # Small layers' weights/biases as flat SMEM scalars.
    b1f = b1.reshape(-1)   # (3,)
    w2f = w2.reshape(-1)   # (9,)
    b2f = b2.reshape(-1)   # (3,)
    w3f = w3.reshape(-1)   # (3,)
    b3f = b3.reshape(-1)   # (1,)

    tile_b, chunk = _choose_tiling(B, F)
    b_pad = _round_up(B, tile_b)
    if b_pad != B:
        x = jnp.pad(x, ((0, b_pad - B), (0, 0)))

    kernel = functools.partial(_qnet_kernel, chunk=chunk)
    smem_spec = pl.BlockSpec(memory_space=pltpu.MemorySpace.SMEM)

    out = pl.pallas_call(
        kernel,
        out_shape=jax.ShapeDtypeStruct((b_pad // chunk, chunk), jnp.float32),
        grid=(b_pad // tile_b,),
        in_specs=[
            pl.BlockSpec((tile_b, F), lambda i: (i, 0)),  # streamed batch tile
            pl.BlockSpec((3, F), lambda i: (0, 0)),       # layer-1 weights stay resident
            smem_spec,   # b1
            smem_spec,   # w2
            smem_spec,   # b2
            smem_spec,   # w3
            smem_spec,   # b3
        ],
        out_specs=pl.BlockSpec((tile_b // chunk, chunk), lambda i: (i, 0)),
        compiler_params=pltpu.CompilerParams(
            dimension_semantics=("parallel",),
            vmem_limit_bytes=48 * 1024 * 1024,  # v5e's 16 MiB scoped default is too small
        ),
    )(x, w1, b1f, w2f, b2f, w3f, b3f)

    # (b_pad//chunk, chunk) row-major flatten preserves batch order; drop padding.
    return out.reshape(-1)[:B].reshape(B, 1)


def init_qnetwork_params(key, input_state_size):
    """Matches the PyTorch module: xavier_uniform weights, biases filled with 0.01.
    Weights in (out, in) layout (same as torch); biases as (out, 1) columns."""
    k1, k2, k3 = jax.random.split(key, 3)

    def xavier(k, fan_out, fan_in):
        limit = math.sqrt(6.0 / (fan_in + fan_out))
        return jax.random.uniform(
            k, (fan_out, fan_in), dtype=jnp.float32, minval=-limit, maxval=limit
        )

    return {
        "w1": xavier(k1, 3, input_state_size),
        "b1": jnp.full((3, 1), 0.01, dtype=jnp.float32),
        "w2": xavier(k2, 3, 3),
        "b2": jnp.full((3, 1), 0.01, dtype=jnp.float32),
        "w3": xavier(k3, 1, 3),
        "b3": jnp.full((1, 1), 0.01, dtype=jnp.float32),
    }


if __name__ == "__main__":
    key = jax.random.PRNGKey(0)
    kx, kp = jax.random.split(key)

    input_state_size = 16
    batch = 8

    x = jax.random.normal(kx, (batch, input_state_size), dtype=jnp.float32)
    params = init_qnetwork_params(kp, input_state_size)

    out = qnetwork_forward(x, params)
    jax.block_until_ready(out)

    # Pure-JAX reference (identical math to the PyTorch module).
    h1 = jnp.maximum(x @ params["w1"].T + params["b1"].T, 0.0)
    h2 = jnp.maximum(h1 @ params["w2"].T + params["b2"].T, 0.0)
    ref = h2 @ params["w3"].T + params["b3"].T
    assert out.shape == (batch, 1)
    assert jnp.allclose(out, ref, atol=1e-5), "mismatch vs reference"

    print("KERNEL_OK")
</pallas_src>

<mosaic_0001>
module attributes {stable_mosaic.version = 11 : i64} {
  func.func @_qnet_kernel(%arg0: i32, %arg1: memref<128x16xf32, #tpu.memory_space<vmem>>, %arg2: memref<3x16xf32, #tpu.memory_space<vmem>>, %arg3: memref<3xf32, #tpu.memory_space<smem>>, %arg4: memref<9xf32, #tpu.memory_space<smem>>, %arg5: memref<3xf32, #tpu.memory_space<smem>>, %arg6: memref<3xf32, #tpu.memory_space<smem>>, %arg7: memref<1xf32, #tpu.memory_space<smem>>, %arg8: memref<1x128xf32, #tpu.memory_space<vmem>>) attributes {dimension_semantics = [#tpu.dimension_semantics<parallel>], iteration_bounds = array<i64: 1>, scalar_prefetch = 0 : i64, scratch_operands = 0 : i64, tpu.core_type = #tpu.core_type<tc>, window_params = [{transform_indices = @transform_0, window_bounds = array<i64: 128, 16>}, {pipeline_mode = #tpu.pipeline_mode<synchronous>, transform_indices = @transform_1, window_bounds = array<i64: 3, 16>}, {transform_indices = @transform_2, window_bounds = array<i64: 3>}, {transform_indices = @transform_3, window_bounds = array<i64: 9>}, {transform_indices = @transform_4, window_bounds = array<i64: 3>}, {transform_indices = @transform_5, window_bounds = array<i64: 3>}, {transform_indices = @transform_6, window_bounds = array<i64: 1>}, {transform_indices = @transform_7, window_bounds = array<i64: 1, 128>}]} {
    %c0 = arith.constant 0 : index
    %0 = memref.load %arg3[%c0] : memref<3xf32, #tpu.memory_space<smem>>
    %c1 = arith.constant 1 : index
    %1 = memref.load %arg3[%c1] : memref<3xf32, #tpu.memory_space<smem>>
    %c2 = arith.constant 2 : index
    %2 = memref.load %arg3[%c2] : memref<3xf32, #tpu.memory_space<smem>>
    %c0_0 = arith.constant 0 : index
    %3 = memref.load %arg4[%c0_0] : memref<9xf32, #tpu.memory_space<smem>>
    %c1_1 = arith.constant 1 : index
    %4 = memref.load %arg4[%c1_1] : memref<9xf32, #tpu.memory_space<smem>>
    %c2_2 = arith.constant 2 : index
    %5 = memref.load %arg4[%c2_2] : memref<9xf32, #tpu.memory_space<smem>>
    %c3 = arith.constant 3 : index
    %6 = memref.load %arg4[%c3] : memref<9xf32, #tpu.memory_space<smem>>
    %c4 = arith.constant 4 : index
    %7 = memref.load %arg4[%c4] : memref<9xf32, #tpu.memory_space<smem>>
    %c5 = arith.constant 5 : index
    %8 = memref.load %arg4[%c5] : memref<9xf32, #tpu.memory_space<smem>>
    %c6 = arith.constant 6 : index
    %9 = memref.load %arg4[%c6] : memref<9xf32, #tpu.memory_space<smem>>
    %c7 = arith.constant 7 : index
    %10 = memref.load %arg4[%c7] : memref<9xf32, #tpu.memory_space<smem>>
    %c8 = arith.constant 8 : index
    %11 = memref.load %arg4[%c8] : memref<9xf32, #tpu.memory_space<smem>>
    %c0_3 = arith.constant 0 : index
    %12 = memref.load %arg5[%c0_3] : memref<3xf32, #tpu.memory_space<smem>>
    %c1_4 = arith.constant 1 : index
    %13 = memref.load %arg5[%c1_4] : memref<3xf32, #tpu.memory_space<smem>>
    %c2_5 = arith.constant 2 : index
    %14 = memref.load %arg5[%c2_5] : memref<3xf32, #tpu.memory_space<smem>>
    %c0_6 = arith.constant 0 : index
    %15 = memref.load %arg6[%c0_6] : memref<3xf32, #tpu.memory_space<smem>>
    %c1_7 = arith.constant 1 : index
    %16 = memref.load %arg6[%c1_7] : memref<3xf32, #tpu.memory_space<smem>>
    %c2_8 = arith.constant 2 : index
    %17 = memref.load %arg6[%c2_8] : memref<3xf32, #tpu.memory_space<smem>>
    %c0_9 = arith.constant 0 : index
    %18 = memref.load %arg7[%c0_9] : memref<1xf32, #tpu.memory_space<smem>>
    %c0_i32 = arith.constant 0 : i32
    %c128_i32 = arith.constant 128 : i32
    %19 = arith.muli %c0_i32, %c128_i32 : i32
    %20 = tpu.assume_multiple %19, 128 : i32
    %21 = arith.index_cast %20 : i32 to index
    %c0_10 = arith.constant 0 : index
    %22 = vector.load %arg1[%21, %c0_10] : memref<128x16xf32, #tpu.memory_space<vmem>>, vector<128x16xf32>
    %c0_11 = arith.constant 0 : index
    %c0_12 = arith.constant 0 : index
    %23 = vector.load %arg2[%c0_11, %c0_12] : memref<3x16xf32, #tpu.memory_space<vmem>>, vector<3x16xf32>
    %cst = arith.constant dense<0.000000e+00> : vector<3x128xf32>
    %24 = tpu.matmul %23, %22, %cst {dimension_numbers = #tpu.dot_dimension_numbers<[1], [1], [0], [0], [0, 0, 1, 0], [], []>} : vector<3x16xf32>, vector<128x16xf32>, vector<3x128xf32> -> vector<3x128xf32>
    %25 = vector.extract_strided_slice %24 {offsets = [0, 0], sizes = [1, 128], strides = [1, 1]} : vector<3x128xf32> to vector<1x128xf32>
    %26 = vector.broadcast %0 : f32 to vector<1x128xf32>
    %27 = arith.addf %25, %26 : vector<1x128xf32>
    %cst_13 = arith.constant 0.000000e+00 : f32
    %28 = vector.broadcast %cst_13 : f32 to vector<1x128xf32>
    %29 = arith.maximumf %27, %28 : vector<1x128xf32>
    %30 = vector.extract_strided_slice %24 {offsets = [1, 0], sizes = [1, 128], strides = [1, 1]} : vector<3x128xf32> to vector<1x128xf32>
    %31 = vector.broadcast %1 : f32 to vector<1x128xf32>
    %32 = arith.addf %30, %31 : vector<1x128xf32>
    %cst_14 = arith.constant 0.000000e+00 : f32
    %33 = vector.broadcast %cst_14 : f32 to vector<1x128xf32>
    %34 = arith.maximumf %32, %33 : vector<1x128xf32>
    %35 = vector.extract_strided_slice %24 {offsets = [2, 0], sizes = [1, 128], strides = [1, 1]} : vector<3x128xf32> to vector<1x128xf32>
    %36 = vector.broadcast %2 : f32 to vector<1x128xf32>
    %37 = arith.addf %35, %36 : vector<1x128xf32>
    %cst_15 = arith.constant 0.000000e+00 : f32
    %38 = vector.broadcast %cst_15 : f32 to vector<1x128xf32>
    %39 = arith.maximumf %37, %38 : vector<1x128xf32>
    %40 = vector.broadcast %3 : f32 to vector<1x128xf32>
    %41 = arith.mulf %40, %29 : vector<1x128xf32>
    %42 = vector.broadcast %4 : f32 to vector<1x128xf32>
    %43 = arith.mulf %42, %34 : vector<1x128xf32>
    %44 = arith.addf %41, %43 : vector<1x128xf32>
    %45 = vector.broadcast %5 : f32 to vector<1x128xf32>
    %46 = arith.mulf %45, %39 : vector<1x128xf32>
    %47 = arith.addf %44, %46 : vector<1x128xf32>
    %48 = vector.broadcast %12 : f32 to vector<1x128xf32>
    %49 = arith.addf %47, %48 : vector<1x128xf32>
    %cst_16 = arith.constant 0.000000e+00 : f32
    %50 = vector.broadcast %cst_16 : f32 to vector<1x128xf32>
    %51 = arith.maximumf %49, %50 : vector<1x128xf32>
    %52 = vector.broadcast %6 : f32 to vector<1x128xf32>
    %53 = arith.mulf %52, %29 : vector<1x128xf32>
    %54 = vector.broadcast %7 : f32 to vector<1x128xf32>
    %55 = arith.mulf %54, %34 : vector<1x128xf32>
    %56 = arith.addf %53, %55 : vector<1x128xf32>
    %57 = vector.broadcast %8 : f32 to vector<1x128xf32>
    %58 = arith.mulf %57, %39 : vector<1x128xf32>
    %59 = arith.addf %56, %58 : vector<1x128xf32>
    %60 = vector.broadcast %13 : f32 to vector<1x128xf32>
    %61 = arith.addf %59, %60 : vector<1x128xf32>
    %cst_17 = arith.constant 0.000000e+00 : f32
    %62 = vector.broadcast %cst_17 : f32 to vector<1x128xf32>
    %63 = arith.maximumf %61, %62 : vector<1x128xf32>
    %64 = vector.broadcast %9 : f32 to vector<1x128xf32>
    %65 = arith.mulf %64, %29 : vector<1x128xf32>
    %66 = vector.broadcast %10 : f32 to vector<1x128xf32>
    %67 = arith.mulf %66, %34 : vector<1x128xf32>
    %68 = arith.addf %65, %67 : vector<1x128xf32>
    %69 = vector.broadcast %11 : f32 to vector<1x128xf32>
    %70 = arith.mulf %69, %39 : vector<1x128xf32>
    %71 = arith.addf %68, %70 : vector<1x128xf32>
    %72 = vector.broadcast %14 : f32 to vector<1x128xf32>
    %73 = arith.addf %71, %72 : vector<1x128xf32>
    %cst_18 = arith.constant 0.000000e+00 : f32
    %74 = vector.broadcast %cst_18 : f32 to vector<1x128xf32>
    %75 = arith.maximumf %73, %74 : vector<1x128xf32>
    %76 = vector.broadcast %15 : f32 to vector<1x128xf32>
    %77 = arith.mulf %76, %51 : vector<1x128xf32>
    %78 = vector.broadcast %16 : f32 to vector<1x128xf32>
    %79 = arith.mulf %78, %63 : vector<1x128xf32>
    %80 = arith.addf %77, %79 : vector<1x128xf32>
    %81 = vector.broadcast %17 : f32 to vector<1x128xf32>
    %82 = arith.mulf %81, %75 : vector<1x128xf32>
    %83 = arith.addf %80, %82 : vector<1x128xf32>
    %84 = vector.broadcast %18 : f32 to vector<1x128xf32>
    %85 = arith.addf %83, %84 : vector<1x128xf32>
    %86 = arith.index_cast %c0_i32 : i32 to index
    %c0_19 = arith.constant 0 : index
    %87 = vector.load %arg8[%86, %c0_19] : memref<1x128xf32, #tpu.memory_space<vmem>>, vector<1x128xf32>
    tpu.vector_store %arg8[%86, %c0_19], %85 {strides = array<i32>} : memref<1x128xf32, #tpu.memory_space<vmem>>, vector<1x128xf32>,
    %c1_i32 = arith.constant 1 : i32
    return
  }
  func.func @transform_0(%arg0: i32) -> (i32, i32) {
    %c0_i32 = arith.constant 0 : i32
    %c0_i32_0 = arith.constant 0 : i32
    return %arg0, %c0_i32 : i32, i32
  }
  func.func @transform_1(%arg0: i32) -> (i32, i32) {
    %c0_i32 = arith.constant 0 : i32
    %c0_i32_0 = arith.constant 0 : i32
    %c0_i32_1 = arith.constant 0 : i32
    return %c0_i32, %c0_i32_0 : i32, i32
  }
  func.func @transform_2(%arg0: i32) -> i32 {
    %c0_i32 = arith.constant 0 : i32
    %c0_i32_0 = arith.constant 0 : i32
    return %c0_i32 : i32
  }
  func.func @transform_3(%arg0: i32) -> i32 {
    %c0_i32 = arith.constant 0 : i32
    %c0_i32_0 = arith.constant 0 : i32
    return %c0_i32 : i32
  }
  func.func @transform_4(%arg0: i32) -> i32 {
    %c0_i32 = arith.constant 0 : i32
    %c0_i32_0 = arith.constant 0 : i32
    return %c0_i32 : i32
  }
  func.func @transform_5(%arg0: i32) -> i32 {
    %c0_i32 = arith.constant 0 : i32
    %c0_i32_0 = arith.constant 0 : i32
    return %c0_i32 : i32
  }
  func.func @transform_6(%arg0: i32) -> i32 {
    %c0_i32 = arith.constant 0 : i32
    %c0_i32_0 = arith.constant 0 : i32
    return %c0_i32 : i32
  }
  func.func @transform_7(%arg0: i32) -> (i32, i32) {
    %c0_i32 = arith.constant 0 : i32
    %c0_i32_0 = arith.constant 0 : i32
    return %arg0, %c0_i32 : i32, i32
  }
}

</mosaic_0001>

<bundles_post_ra>
// kernel: tpu_custom_call.1
= control target key start
LH: loop header
LB: loop body
LE: loop exit
PB: predicated region body
PF: predicated region fallthrough
CT: control target
= control target key end

     0   :  { %13 = vsyncpa [#allocation5], 0  ;;  %s542_s0 = inlined_call_operand.vmem [shape: f32[128,16], index: 0, kind: input, shape index: {}]   ;;  %s543_s1 = inlined_call_operand.vmem [shape: f32[3,16], index: 1, kind: input, shape index: {}]   ;;  %s544_s2 = inlined_call_operand.vmem [shape: f32[3], index: 2, kind: input, shape index: {}]   ;;  %s545_s3 = inlined_call_operand.vmem [shape: f32[9], index: 3, kind: input, shape index: {}]   ;;  %s546_s4 = inlined_call_operand.vmem [shape: f32[3], index: 4, kind: input, shape index: {}]   ;;  %s547_s5 = inlined_call_operand.vmem [shape: f32[3], index: 5, kind: input, shape index: {}]   ;;  %s548_s6 = inlined_call_operand.<no memory space> [shape: f32[1], index: 6, kind: input, shape index: {}]   ;;  %s549_s7 = inlined_call_operand.hbm [shape: f32[1,128], index: 7, kind: output, shape index: {}]  }
   0x1   :  { %14 = vsyncpa [#allocation7], 0 }
   0x2   :  { %15 = vsyncpa [#allocation10], 0  ;;  %s35_s26 = sshll.u32 %s545_s3, 4  ;;  %s36_s26 = int_to_ptr.vmem [resolvable:$true] %s35_s26 }
   0x3   :  { %16 = vsyncpa [#allocation4], 0  ;;  %s26_s29 = sshll.u32 %s544_s2, 4  ;;  %s390_s30 = smov [#allocation6]   ;;  %s27_s29 = int_to_ptr.vmem [resolvable:$true] %s26_s29 }
   0x4   :  { %38 = dma.vmem_to_smem %s36_s26, 16, %s390_s30, [#allocation7]  }
   0x5   :  { %s391_s8 = smov [#allocation3]   ;;  %s44_s11 = sshll.u32 %s546_s4, 4  ;;  %s45_s11 = int_to_ptr.vmem [resolvable:$true] %s44_s11 }
   0x6   :  { %29 = dma.vmem_to_smem %s27_s29, 16, %s391_s8, [#allocation5]  }
   0x7   :  { %s53_s3 = sshll.u32 %s547_s5, 4  ;;  %s392_s14 = smov [#allocation8]   ;;  %s54_s3 = int_to_ptr.vmem [resolvable:$true] %s53_s3 }
   0x8   :  { %47 = dma.vmem_to_smem %s45_s11, 16, %s392_s14, [#allocation7]  }
   0x9   :  { %s393_s15 = smov [#allocation9]  }
   0xa   :  { %56 = dma.vmem_to_smem %s54_s3, 16, %s393_s15, [#allocation10]  }
   0xb   :  { %382 = dma.done.wait [#allocation5], 16  }
   0xc   :  { %383 = vsyncadd [#allocation5], 4294967280 }
   0xd   :  { %384 = dma.done.wait [#allocation7], 32  }
   0xe   :  { %385 = vsyncadd [#allocation7], 4294967264 }
   0xf   :  { %386 = dma.done.wait [#allocation10], 16  }
  0x10   :  { %387 = vsyncadd [#allocation10], 4294967280 }
  0x11   :  { %75 = sfence }
  0x12   :  { %v110_v0 = vld [vmem:[%s542_s0 + $0x78] sm:$0xff]  ;;  %vm112_vm0 = vcmask 130048   ;;  %v109_v1 = vld [vmem:[%s542_s0 + $0x70] sm:$0xff]  ;;  %v108_v2 = vld [vmem:[%s542_s0 + $0x68] sm:$0xff]  ;;  %s76_s20 = sld [smem:[#allocation3]]  ;;  %s394_s14 = smov [#allocation11]  }
  0x13   :  { %288 = vmatpush.xpose.msk.msra.mxu0 %vm112_vm0, %v110_v0  ;;  %v107_v3 = vld [vmem:[%s542_s0 + $0x60] sm:$0xff]  ;;  %v106_v4 = vld [vmem:[%s542_s0 + $0x58] sm:$0xff]  ;;  %v105_v5 = vld [vmem:[%s542_s0 + $0x50] sm:$0xff]  ;;  %s274_s21 = sld [smem:[#allocation3 + $0x1]]  ;;  %s260_s15 = sshll.u32 %s394_s14, 4  ;;  %s261_s15 = int_to_ptr.vmem [resolvable:$true] %s260_s15 }
  0x14   :  { %v104_v6 = vld [vmem:[%s542_s0 + $0x48] sm:$0xff]  ;;  %v103_v7 = vld [vmem:[%s542_s0 + $0x40] sm:$0xff]  ;;  %v102_v8 = vld [vmem:[%s542_s0 + $0x38] sm:$0xff]  ;;  %s275_s22 = sld [smem:[#allocation3 + $0x2]]  ;;  %s262_s4 = sshll.u32 %s549_s7, 4  ;;  %s263_s4 = int_to_ptr.hbm [resolvable:$true] %s262_s4 }
  0x15   :  { %v101_v9 = vld [vmem:[%s542_s0 + $0x30] sm:$0xff]  ;;  %v100_v10 = vld [vmem:[%s542_s0 + $0x28] sm:$0xff]  ;;  %v99_v11 = vld [vmem:[%s542_s0 + $0x20] sm:$0xff]  ;;  %s515_s23 = sld [smem:[#allocation6]] }
  0x16   :  { %v98_v12 = vld [vmem:[%s542_s0 + $0x18] sm:$0xff]  ;;  %v97_v13 = vld [vmem:[%s542_s0 + $0x10] sm:$0xff]  ;;  %v96_v14 = vld [vmem:[%s542_s0 + $0x8] sm:$0xff]  ;;  %s276_s24 = sld [smem:[#allocation6 + $0x1]] }
  0x17   :  { %289 = vmatpush.xpose.msk.msra.mxu0 %vm112_vm0, %v109_v1  ;;  %v95_v15 = vld [vmem:[%s542_s0] sm:$0xff]  ;;  %s277_s25 = sld [smem:[#allocation6 + $0x2]] }
  0x18   :  { %v111_v16 = vld [vmem:[%s543_s1] sm:$0x7]  ;;  %s517_s26 = sld [smem:[#allocation6 + $0x3]]  ;;  %v184_v17 = vstv %s76_s20 }
  0x19   :  { %s279_s27 = sld [smem:[#allocation6 + $0x4]]  ;;  %v187_v18 = vstv %s274_s21 }
  0x1a   :  { %s280_s28 = sld [smem:[#allocation6 + $0x5]]  ;;  %v190_v19 = vstv %s275_s22 }
  0x1b   :  { %290 = vmatpush.xpose.msk.msra.mxu0 %vm112_vm0, %v108_v2  ;;  %s282_s0 = sld [smem:[#allocation6 + $0x7]]  ;;  %v193_v32 = vstv %s515_s23 }
  0x1c   :  { %s519_s29 = sld [smem:[#allocation6 + $0x8]]  ;;  %v195_v24 = vstv %s276_s24 }
  0x1d   :  { %s521_s30 = sld [smem:[#allocation6 + $0x6]]  ;;  %v201_v25 = vstv %s277_s25 }
  0x1e   :  { %s523_s1 = sld [smem:[#allocation8]]  ;;  %v210_v36 = vstv %s517_s26 }
  0x1f   :  { %291 = vmatpush.xpose.msk.msra.mxu0 %vm112_vm0, %v107_v3  ;;  %v212_v26 = vstv %s279_s27  ;;  %s525_s8 = sld [smem:[#allocation8 + $0x1]] }
  0x20   :  { %v218_v27 = vstv %s280_s28  ;;  %s527_s9 = sld [smem:[#allocation8 + $0x2]] }
  0x21   :  { %v229_v31 = vstv %s282_s0  ;;  %s91_s10 = sld [smem:[#allocation9]] }
  0x22   :  { %v235_v33 = vstv %s519_s29  ;;  %s286_s11 = sld [smem:[#allocation9 + $0x1]] }
  0x23   :  { %292 = vmatpush.xpose.msk.msra.mxu0 %vm112_vm0, %v106_v4  ;;  %v227_v37 = vstv %s521_s30  ;;  %s287_s12 = sld [smem:[#allocation9 + $0x2]] }
  0x24   :  { %v207_v50 = vstv %s523_s1 }
  0x25   :  { %v224_v56 = vstv %s525_s8 }
  0x26   :  { %v241_v57 = vstv %s527_s9 }
  0x27   :  { %293 = vmatpush.xpose.msk.msra.mxu0 %vm112_vm0, %v105_v5  ;;  %v244_v63 = vstv %s91_s10 }
  0x28   :  { %v246_v1 = vstv %s286_s11 }
  0x29   :  { %v249_v5 = vstv %s287_s12 }
  0x2b   :  { %294 = vmatpush.xpose.msk.msra.mxu0 %vm112_vm0, %v104_v6 }
  0x2f   :  { %295 = vmatpush.xpose.msk.msra.mxu0 %vm112_vm0, %v103_v7 }
  0x33   :  { %296 = vmatpush.xpose.msk.msra.mxu0 %vm112_vm0, %v102_v8 }
  0x37   :  { %297 = vmatpush.xpose.msk.msra.mxu0 %vm112_vm0, %v101_v9  ;;  %v252_v9 = vstv %s548_s6 }
  0x3b   :  { %298 = vmatpush.xpose.msk.msra.mxu0 %vm112_vm0, %v100_v10 }
  0x3f   :  { %299 = vmatpush.xpose.msk.msra.mxu0 %vm112_vm0, %v99_v11 }
  0x43   :  { %300 = vmatpush.xpose.msk.msra.mxu0 %vm112_vm0, %v98_v12 }
  0x47   :  { %301 = vmatpush.xpose.msk.msra.mxu0 %vm112_vm0, %v97_v13 }
  0x4b   :  { %302 = vmatpush.xpose.msk.msra.mxu0 %vm112_vm0, %v96_v14 }
  0x4f   :  { %303 = vmatpush.xpose.msk.msra.mxu0 %vm112_vm0, %v95_v15 }
  0x52   :  { %304 = vmatmul.msk.f32.vlgmr.msra.gmra.mxu0 %vm112_vm0, %v111_v16 }
  0xcf   :  { %v181_v20 = vpop.f32.mrf.mxu0 }
  0xd0   :  { %v185_v21 = vadd.f32 %v184_v17, %v181_v20  ;;  %v188_v22 = vadd.f32 %v187_v18, %v181_v20  ;;  %v191_v23 = vadd.f32 %v190_v19, %v181_v20 }
  0xd2   :  { %v186_v28 = vmax.f32 %v185_v21, 0.0  ;;  %v189_v29 = vmax.f32 %v188_v22, 0.0  ;;  %v192_v30 = vmax.f32 %v191_v23, 0.0 }
  0xd4   :  { %v196_v34 = vmul.f32 %v195_v24, %v189_v29  ;;  %v202_v35 = vmul.f32 %v201_v25, %v192_v30  ;;  %v213_v38 = vmul.f32 %v212_v26, %v189_v29  ;;  %v219_v39 = vmul.f32 %v218_v27, %v192_v30 }
  0xd5   :  { %v230_v40 = vmul.f32 %v229_v31, %v189_v29  ;;  %v194_v41 = vmul.f32 %v193_v32, %v186_v28  ;;  %v236_v43 = vmul.f32 %v235_v33, %v192_v30  ;;  %v211_v44 = vmul.f32 %v210_v36, %v186_v28 }
  0xd6   :  { %v198_v42 = vrot.slane %v196_v34, 1  ;;  %v215_v45 = vrot.slane %v213_v38, 1  ;;  %v228_v46 = vmul.f32 %v227_v37, %v186_v28  ;;  %v204_v49 = vrot.slane %v202_v35, 2 }
  0xd7   :  { %v232_v47 = vrot.slane %v230_v40, 1  ;;  %v221_v52 = vrot.slane %v219_v39, 2  ;;  %v238_v54 = vrot.slane %v236_v43, 2 }
  0xd8   :  { %v200_v48 = vadd.f32 %v198_v42, %v194_v41  ;;  %v217_v51 = vadd.f32 %v215_v45, %v211_v44 }
  0xd9   :  { %v234_v53 = vadd.f32 %v232_v47, %v228_v46 }
  0xda   :  { %v206_v55 = vadd.f32 %v204_v49, %v200_v48  ;;  %v223_v58 = vadd.f32 %v221_v52, %v217_v51 }
  0xdb   :  { %v240_v59 = vadd.f32 %v238_v54, %v234_v53 }
  0xdc   :  { %v208_v60 = vadd.f32 %v207_v50, %v206_v55  ;;  %v225_v61 = vadd.f32 %v224_v56, %v223_v58 }
  0xdd   :  { %v242_v62 = vadd.f32 %v241_v57, %v240_v59 }
  0xde   :  { %v209_v0 = vmax.f32 %v208_v60, 0.0  ;;  %v226_v2 = vmax.f32 %v225_v61, 0.0 }
  0xdf   :  { %v243_v3 = vmax.f32 %v242_v62, 0.0 }
  0xe0   :  { %v245_v4 = vmul.f32 %v244_v63, %v209_v0  ;;  %v247_v6 = vmul.f32 %v246_v1, %v226_v2 }
  0xe1   :  { %v250_v8 = vmul.f32 %v249_v5, %v243_v3 }
  0xe2   :  { %v248_v7 = vadd.f32 %v247_v6, %v245_v4 }
  0xe4   :  { %v251_v10 = vadd.f32 %v250_v8, %v248_v7 }
  0xe6   :  { %v253_v11 = vadd.f32 %v252_v9, %v251_v10 }
  0xe8   :  { %254 = vst [vmem:[#allocation11] sm:$0x1] %v253_v11 }
  0xe9   :  { %265 = dma.vmem_to_hbm [thread:$0]  %s261_s15, 16, %s263_s4, [#allocation4]  }
  0xea   :  { %388 = dma.done.wait [#allocation4], 16  }
  0xeb   :  { %389 = vsyncadd [#allocation4], 4294967280 }
  0xec   :  { %270 = vsyncpa [#allocation4], 1 }
  0xed   :  { %271 = vsyncpa [#allocation5], 1 }
  0xee   :  { %272 = vsyncpa [#allocation7], 1 }
  0xef   :  { %273 = vsyncpa [#allocation10], 1 }

</bundles_post_ra>
